<compile_context>
chip_gen: v5e
topology: v5e:2x2
jax: 0.10.0
libtpu: 0.0.40
codegen_flags: <defaults>
</compile_context>

<pallas_src>
import jax
import jax.numpy as jnp
from jax.experimental import pallas as pl
from jax.experimental.pallas import tpu as pltpu


# Below this size a kernel launch + pipeline prologue dwarfs the copy itself.
_SMALL_BYTES = 256 * 1024
# ~4 MiB per block; with double-buffered input + output that is ~16 MiB of
# VMEM -- safe on v7x (64 MiB physical) and well under the 48 MiB cap below.
_TARGET_BLOCK_BYTES = 4 * 1024 * 1024
_VMEM_LIMIT_BYTES = 48 * 1024 * 1024
# Wide lane widths first: lane-dense output is the biggest measured lever.
_LANE_WIDTHS = (8192, 4096, 2048, 1024, 512, 256, 128)


def _copy_kernel(x_ref, o_ref):
    # Pure copy: forward(x) = x.
    o_ref[...] = x_ref[...]


def _identity_pallas(x):
    orig_shape = x.shape
    dtype = x.dtype
    n = x.size
    itemsize = jnp.dtype(dtype).itemsize

    # --- lane-dense 2D view ------------------------------------------------
    cw = None
    for cand in _LANE_WIDTHS:
        if n % cand == 0:
            cw = cand
            break
    if cw is not None:
        x2d = x.reshape(n // cw, cw)          # lane-dense: C is a big multiple of 128
    elif x.ndim >= 2:
        x2d = x.reshape(-1, orig_shape[-1])   # fallback: keep natural last dim
    else:
        x2d = x.reshape(1, n)                 # 0-D / 1-D fallback (single block)

    R, C = x2d.shape

    # --- tile rows targeting ~4 MiB per block ------------------------------
    rows_target = max(1, _TARGET_BLOCK_BYTES // max(1, C * itemsize))
    if rows_target >= R:
        tr = R                                # single block covers all rows
    else:
        tr = max(8, (rows_target // 8) * 8)   # sublane-aligned row tile
    grid = (pl.cdiv(R, tr),)

    out2d = pl.pallas_call(
        _copy_kernel,
        out_shape=jax.ShapeDtypeStruct((R, C), dtype),
        grid_spec=pltpu.PrefetchScalarGridSpec(
            num_scalar_prefetch=0,
            grid=grid,
            in_specs=[pl.BlockSpec((tr, C), lambda i: (i, 0))],
            out_specs=pl.BlockSpec((tr, C), lambda i: (i, 0)),
        ),
        # Let XLA alias input and output HBM buffers (avoids a second buffer
        # when the input is donatable under jit).
        input_output_aliases={0: 0},
        compiler_params=pltpu.CompilerParams(
            dimension_semantics=("parallel",),
            vmem_limit_bytes=_VMEM_LIMIT_BYTES,
        ),
    )(x2d)

    return out2d.reshape(orig_shape)


def identity(x, *, force_kernel=False):
    """Identity forward pass.

    Fast path returns `x` directly (a true Identity needs no HBM traffic at
    all); `force_kernel=True` routes through the Pallas copy kernel.
    """
    x = jnp.asarray(x)
    if x.size == 0:
        return x
    if not force_kernel and x.size * x.dtype.itemsize < _SMALL_BYTES:
        # Short-circuit: for a true Identity op this is the whole optimization.
        return x
    return _identity_pallas(x)


if __name__ == "__main__":
    key = jax.random.PRNGKey(0)
    # Small NCHW-style input: batch=2, channels=4, spatial=16x16.
    x = jax.random.normal(key, (2, 4, 16, 16), dtype=jnp.float32)

    # 1) Default path: tiny input -> short-circuit, no kernel launch.
    y_fast = identity(x)
    jax.block_until_ready(y_fast)
    assert y_fast.shape == x.shape and y_fast.dtype == x.dtype
    assert bool(jnp.all(y_fast == x)), "identity fast-path mismatch"

    # 2) Forced kernel path: exercises the lane-dense Pallas copy kernel.
    y_kern = identity(x, force_kernel=True)
    jax.block_until_ready(y_kern)
    assert y_kern.shape == x.shape and y_kern.dtype == x.dtype
    assert bool(jnp.all(y_kern == x)), "identity kernel mismatch"

    # 3) Element count not divisible by 128: exercises the narrow fallback.
    x2 = jax.random.normal(jax.random.PRNGKey(0), (3, 5, 7), dtype=jnp.float32)
    y2 = identity(x2, force_kernel=True)
    jax.block_until_ready(y2)
    assert y2.shape == x2.shape and y2.dtype == x2.dtype
    assert bool(jnp.all(y2 == x2)), "identity fallback mismatch"

    print("KERNEL_OK")
</pallas_src>

<mosaic_0001>
module attributes {stable_mosaic.version = 11 : i64} {
  func.func @_copy_kernel(%arg0: i32, %arg1: memref<1x2048xf32, #tpu.memory_space<vmem>>, %arg2: memref<1x2048xf32, #tpu.memory_space<vmem>>) attributes {dimension_semantics = [#tpu.dimension_semantics<parallel>], iteration_bounds = array<i64: 1>, scalar_prefetch = 0 : i64, scratch_operands = 0 : i64, tpu.core_type = #tpu.core_type<tc>, window_params = [{transform_indices = @transform_0, window_bounds = array<i64: 1, 2048>}, {transform_indices = @transform_1, window_bounds = array<i64: 1, 2048>}]} {
    %c0 = arith.constant 0 : index
    %c0_0 = arith.constant 0 : index
    %0 = vector.load %arg1[%c0, %c0_0] : memref<1x2048xf32, #tpu.memory_space<vmem>>, vector<1x2048xf32>
    %c0_1 = arith.constant 0 : index
    %c0_2 = arith.constant 0 : index
    %1 = vector.load %arg2[%c0_1, %c0_2] : memref<1x2048xf32, #tpu.memory_space<vmem>>, vector<1x2048xf32>
    tpu.vector_store %arg2[%c0_1, %c0_2], %0 {strides = array<i32>} : memref<1x2048xf32, #tpu.memory_space<vmem>>, vector<1x2048xf32>,
    return
  }
  func.func @transform_0(%arg0: i32) -> (i32, i32) {
    %c0_i32 = arith.constant 0 : i32
    %c0_i32_0 = arith.constant 0 : i32
    return %arg0, %c0_i32 : i32, i32
  }
  func.func @transform_1(%arg0: i32) -> (i32, i32) {
    %c0_i32 = arith.constant 0 : i32
    %c0_i32_0 = arith.constant 0 : i32
    return %arg0, %c0_i32 : i32, i32
  }
}

</mosaic_0001>

<bundles_post_ra>
// kernel: tpu_custom_call.1
= control target key start
LH: loop header
LB: loop body
LE: loop exit
PB: predicated region body
PF: predicated region fallthrough
CT: control target
= control target key end

     0   :  { %6 = vsyncpa [#allocation3], 0  ;;  %s116_s0 = inlined_call_operand.hbm [shape: f32[1,2048], index: 0, kind: input, shape index: {}, may-alias: {0,1}]   ;;  %s117_s1 = inlined_call_operand.hbm [shape: f32[1,2048], index: 1, kind: output, shape index: {}, may-alias: {0,1}]  }
   0x1   :  { %7 = vsyncpa [#allocation4], 0  ;;  %s13_s8 = sshll.u32 %s116_s0, 4  ;;  %s98_s9 = smov [#allocation2]   ;;  %s14_s8 = int_to_ptr.hbm [resolvable:$true] %s13_s8 }
   0x2   :  { %s15_s10 = sshll.u32 %s98_s9, 4  ;;  %s16_s10 = int_to_ptr.vmem [resolvable:$true] %s15_s10 }
   0x3   :  { %18 = dma.hbm_to_vmem [thread:$0]  %s14_s8, 256, %s16_s10, [#allocation3]  }
   0x4   :  { %94 = dma.done.wait [#allocation3], 256  }
   0x5   :  { %95 = vsyncadd [#allocation3], 4294967040  ;;  %s99_s11 = smov [#allocation5]   ;;  %s34_s15 = sshll.u32 %s117_s1, 4  ;;  %v23_v0 = vld [vmem:[#allocation2] sm:$0xff]  ;;  %v24_v1 = vld [vmem:[#allocation2 + $0x8] sm:$0xff]  ;;  %s35_s15 = int_to_ptr.hbm [resolvable:$true] %s34_s15 }
   0x6   :  { %s32_s12 = sshll.u32 %s99_s11, 4  ;;  %25 = vst [vmem:[#allocation5] sm:$0xff] %v23_v0  ;;  %s33_s12 = int_to_ptr.vmem [resolvable:$true] %s32_s12 }
   0x7   :  { %26 = vst [vmem:[#allocation5 + $0x8] sm:$0xff] %v24_v1 }
   0x8   :  { %37 = dma.vmem_to_hbm [thread:$0]  %s33_s12, 256, %s35_s15, [#allocation4]  }
   0x9   :  { %96 = dma.done.wait [#allocation4], 256  }
   0xa   :  { %97 = vsyncadd [#allocation4], 4294967040 }
   0xb   :  { %42 = vsyncpa [#allocation3], 1 }
   0xc   :  { %43 = vsyncpa [#allocation4], 1 }

</bundles_post_ra>
